<compile_context>
chip_gen: v7x
topology: tpu7x:2x2x1
jax: 0.10.0
libtpu: 0.0.40
codegen_flags: <defaults>
</compile_context>

<pallas_src>
import numpy as np
import jax
import jax.numpy as jnp
from jax.experimental import pallas as pl
from jax.experimental.pallas import tpu as pltpu


def _round_up(x, m):
    return (x + m - 1) // m * m


def _vmem_capacity_bytes():
    try:
        info = pltpu.get_tpu_info()
        cap = getattr(info, "vmem_capacity_bytes", None)
        if cap:
            return int(cap)
    except Exception:
        pass
    return 64 * 1024 * 1024  # conservative (v7x per-TC)


def s5hubert_cls_head(hidden_states, padding_mask, w_proj, b_proj, w_cls, t_tile=None):
    """Fused masked-mean pool -> projector -> classifier.

    hidden_states: (B, T, H)   any float dtype (streamed as-is, cast per-tile)
    padding_mask:  (B, T) {0,1} or None (feature-level; None => plain mean over T)
    w_proj: (H, P), b_proj: (P,), w_cls: (P, L)   (pre-transposed for right-multiply)
    """
    B, T, H = hidden_states.shape
    P = w_proj.shape[1]
    L = w_cls.shape[1]

    # Lane-dense output slab (L may be < 128 or not a multiple of 128).
    L_pad = _round_up(L, 128)

    # Batch tiling: cap at 8 sublanes; partial last batch block is handled by Pallas
    # (garbage overhang rows never mix with valid rows; overhang writes are clipped).
    B_tile = 8 if B > 8 else B

    # Time tiling: largest multiple-of-128 tile that fits the per-generation budget.
    itemsize = jnp.dtype(hidden_states.dtype).itemsize
    vmem_cap = _vmem_capacity_bytes()
    if vmem_cap >= 96 * 1024 * 1024:       # v5e / v6e: 128 MiB physical VMEM
        budget = 16 * 1024 * 1024
    elif vmem_cap >= 48 * 1024 * 1024:     # v7x: 64 MiB per TensorCore
        budget = 12 * 1024 * 1024
    else:
        budget = 6 * 1024 * 1024
    max_rows = max(128, (budget // (B_tile * H * itemsize)) // 128 * 128)

    if t_tile is not None and t_tile < T:
        assert t_tile % 128 == 0, "forced t_tile must be a multiple of 128"
        T_tile = t_tile
    elif T <= max_rows:
        T_tile = T
    else:
        T_tile = max_rows

    grid_b = pl.cdiv(B, B_tile)
    grid_t = pl.cdiv(T, T_tile)
    need_tail_mask = (T % T_tile) != 0     # static: only trace the tail `where` if required

    # Small auxiliary inputs, O(B*T) / O(B) -- negligible vs the (B,T,H) hidden-state stream.
    if padding_mask is None:
        mask = jnp.ones((B, T, 1), jnp.float32)
        inv_cnt = jnp.full((B, 1), 1.0 / float(T), jnp.float32)
    else:
        m2 = padding_mask.astype(jnp.float32)
        mask = m2.reshape(B, T, 1)
        # max(.,1) guards the all-padded-row degenerate case (torch would yield NaN there).
        inv_cnt = 1.0 / jnp.maximum(jnp.sum(m2, axis=1, keepdims=True), 1.0)

    wp = w_proj
    wc = w_cls if L_pad == L else jnp.pad(w_cls, ((0, 0), (0, L_pad - L)))
    bp = b_proj.reshape(1, P).astype(jnp.float32)

    def kernel(h_ref, mask_ref, inv_ref, wp_ref, bp_ref, wc_ref, out_ref, acc_ref):
        t = pl.program_id(1)

        @pl.when(t == 0)
        def _init():
            acc_ref[...] = jnp.zeros_like(acc_ref)

        # VPU masked time-sum, f32 accumulation.  h is cast per-tile (native dtype stream).
        h = h_ref[...].astype(jnp.float32)          # (B_tile, T_tile, H)
        m = mask_ref[...]                           # (B_tile, T_tile, 1) f32
        contrib = h * m
        if need_tail_mask:
            # Explicitly zero the ragged tail against the true T; do NOT rely on the mask
            # alone (out-of-bounds reads may hold NaN/Inf bit patterns and 0*NaN = NaN).
            t_idx = t * T_tile + jax.lax.broadcasted_iota(
                jnp.int32, (B_tile, T_tile, 1), 1)
            contrib = jnp.where(t_idx < T, contrib, 0.0)
        acc_ref[...] += jnp.sum(contrib, axis=1)    # (B_tile, H)

        @pl.when(t == pl.num_programs(1) - 1)
        def _finalize():
            pooled = acc_ref[...] * inv_ref[...]    # (B_tile, H) f32
            proj = jnp.dot(pooled, wp_ref[...].astype(jnp.float32),
                           preferred_element_type=jnp.float32) + bp_ref[...]
            logits = jnp.dot(proj, wc_ref[...].astype(jnp.float32),
                             preferred_element_type=jnp.float32)
            out_ref[...] = logits                   # (B_tile, L_pad) f32, lane-dense

        # reduce unused-arg lint noise (inv/wp/bp/wc only read at finalize)
        del t

    # VMEM accounting (double-buffered inputs/outputs + scratch + headroom).
    wbytes = (H * P * jnp.dtype(w_proj.dtype).itemsize
              + P * 4
              + P * L_pad * jnp.dtype(w_cls.dtype).itemsize)
    h_blk = B_tile * T_tile * H * itemsize
    mask_blk = B_tile * T_tile * 4
    small = B_tile * 4 + B_tile * L_pad * 4 + wbytes
    needed = 2 * (h_blk + mask_blk + small) + B_tile * H * 4 + (2 << 20)
    vmem_limit = int(min(max(needed, 32 << 20), max(vmem_cap - (4 << 20), 32 << 20)))

    cost = pl.CostEstimate(
        flops=2 * B * T * H + 2 * B * (H * P + P * L_pad),
        transcendentals=0,
        bytes_accessed=(B * T * H * itemsize + B * T * 4 + B * 4
                        + wbytes + B * L_pad * 4),
    )

    out = pl.pallas_call(
        kernel,
        out_shape=jax.ShapeDtypeStruct((B, L_pad), jnp.float32),
        grid_spec=pltpu.PrefetchScalarGridSpec(
            num_scalar_prefetch=0,
            grid=(grid_b, grid_t),
            in_specs=[
                pl.BlockSpec((B_tile, T_tile, H), lambda b, t: (b, t, 0)),  # hidden states
                pl.BlockSpec((B_tile, T_tile, 1), lambda b, t: (b, t, 0)),  # padding mask
                pl.BlockSpec((B_tile, 1), lambda b, t: (b, 0)),             # 1/count
                pl.BlockSpec((H, P), lambda b, t: (0, 0)),                  # W_proj (resident)
                pl.BlockSpec((1, P), lambda b, t: (0, 0)),                  # b_proj (resident)
                pl.BlockSpec((P, L_pad), lambda b, t: (0, 0)),              # W_cls  (resident)
            ],
            out_specs=pl.BlockSpec((B_tile, L_pad), lambda b, t: (b, 0)),
            scratch_shapes=[pltpu.VMEM((B_tile, H), jnp.float32)],
        ),
        compiler_params=pltpu.CompilerParams(
            dimension_semantics=("parallel", "arbitrary"),
            vmem_limit_bytes=vmem_limit),
        cost_estimate=cost,
    )(hidden_states, mask, inv_cnt, wp, bp, wc)
    return out[:, :L]


def s5hubert_for_sequence_classification_forward(
    all_hidden_states,            # tuple/list of (B, T, H) arrays (hubert hidden_states)
    params,                       # dict: w_proj (H,P), b_proj (P,), w_cls (P,L)
    segmentation_layer=8,
    padding_mask=None,            # feature-level mask (B, T) or None
    labels=None,                  # (B,) int32 or None
    t_tile=None,
):
    hidden_states = all_hidden_states[segmentation_layer]
    logits = s5hubert_cls_head(hidden_states, padding_mask,
                               params["w_proj"], params["b_proj"], params["w_cls"],
                               t_tile=t_tile)
    loss = None
    if labels is not None:
        # nn.CrossEntropyLoss: mean over batch of -log softmax[label] (glue, plain JAX)
        logp = jax.nn.log_softmax(logits, axis=-1)
        loss = -jnp.mean(jnp.take_along_axis(logp, labels[:, None], axis=-1))
    return loss, logits


def _reference(hidden_states, padding_mask, w_proj, b_proj, w_cls):
    # Torch-order reference (project -> mask -> pool -> classify) in f32.
    h = hidden_states.astype(jnp.float32)
    proj = h @ w_proj.astype(jnp.float32) + b_proj.astype(jnp.float32)[None, None, :]
    if padding_mask is None:
        pooled = proj.mean(axis=1)
    else:
        m = padding_mask.astype(jnp.float32)[:, :, None]
        pooled = (proj * m).sum(axis=1) / jnp.maximum(m.sum(axis=1), 1.0)
    return pooled @ w_cls.astype(jnp.float32)


if __name__ == "__main__":
    # Small synthetic shapes consistent with the module's forward:
    # batch=2, frames=8, hidden_size=32, classifier_proj_size=16, num_labels=24,
    # segmentation_layer=2 (stand-in stack of 4 "layers").
    B, T, H, P, L = 2, 8, 32, 16, 24
    seg_layer = 2
    key = jax.random.PRNGKey(0)
    k_hs, k_wp, k_bp, k_wc, k_lab, k_hs2 = jax.random.split(key, 6)

    # Synthetic HuBERT hidden states (one array per layer index 0..3), native f32.
    all_hs = tuple(
        jax.random.normal(jax.random.fold_in(k_hs, i), (B, T, H), jnp.float32)
        for i in range(4)
    )

    # Head parameters (shapes from __init__: Linear(H,P), Linear(P,L,bias=False)),
    # stored pre-transposed for right-multiply.
    params = {
        "w_proj": 0.05 * jax.random.normal(k_wp, (H, P), jnp.float32),
        "b_proj": 0.01 * jax.random.normal(k_bp, (P,), jnp.float32),
        "w_cls": 0.05 * jax.random.normal(k_wc, (P, L), jnp.float32),
    }

    # Feature-level padding mask: sequence lengths [8, 5].
    lengths = jnp.array([8, 5], jnp.int32)
    padding_mask = (jnp.arange(T)[None, :] < lengths[:, None]).astype(jnp.float32)
    labels = jax.random.randint(k_lab, (B,), 0, L)

    loss, logits = s5hubert_for_sequence_classification_forward(
        all_hs, params, segmentation_layer=seg_layer,
        padding_mask=padding_mask, labels=labels)
    logits = jax.block_until_ready(logits)
    loss = jax.block_until_ready(loss)
    assert bool(jnp.isfinite(loss)), "loss is not finite"

    ref = _reference(all_hs[seg_layer], padding_mask,
                     params["w_proj"], params["b_proj"], params["w_cls"])
    np.testing.assert_allclose(np.asarray(logits), np.asarray(ref),
                               rtol=1e-3, atol=1e-4)

    # attention_mask=None branch (plain mean over time).
    _, logits_nomask = s5hubert_for_sequence_classification_forward(
        all_hs, params, segmentation_layer=seg_layer, padding_mask=None)
    logits_nomask = jax.block_until_ready(logits_nomask)
    ref_nomask = _reference(all_hs[seg_layer], None,
                            params["w_proj"], params["b_proj"], params["w_cls"])
    np.testing.assert_allclose(np.asarray(logits_nomask), np.asarray(ref_nomask),
                               rtol=1e-3, atol=1e-4)

    # Exercise the tiled time-reduction path with a ragged tail (300 % 128 != 0),
    # i.e. multi-step accumulation + in-kernel iota tail masking, no wrapper-side pad.
    T2 = 300
    hs2 = jax.random.normal(k_hs2, (B, T2, H), jnp.float32)
    lengths2 = jnp.array([300, 200], jnp.int32)
    mask2 = (jnp.arange(T2)[None, :] < lengths2[:, None]).astype(jnp.float32)
    logits2 = s5hubert_cls_head(hs2, mask2, params["w_proj"], params["b_proj"],
                                params["w_cls"], t_tile=128)
    logits2 = jax.block_until_ready(logits2)
    ref2 = _reference(hs2, mask2, params["w_proj"], params["b_proj"], params["w_cls"])
    np.testing.assert_allclose(np.asarray(logits2), np.asarray(ref2),
                               rtol=1e-3, atol=1e-4)

    # Native-bf16 hidden states (encoder emitting bf16): kernel casts per-tile, no wrapper copy.
    hs2_bf16 = hs2.astype(jnp.bfloat16)
    logits3 = s5hubert_cls_head(hs2_bf16, mask2, params["w_proj"], params["b_proj"],
                                params["w_cls"], t_tile=128)
    logits3 = jax.block_until_ready(logits3)
    ref3 = _reference(hs2_bf16, mask2, params["w_proj"], params["b_proj"], params["w_cls"])
    np.testing.assert_allclose(np.asarray(logits3), np.asarray(ref3),
                               rtol=1e-2, atol=1e-3)

    print("KERNEL_OK")
</pallas_src>

<mosaic_0001>
module attributes {stable_mosaic.version = 11 : i64} {
  func.func @kernel(%arg0: i32, %arg1: i32, %arg2: memref<2x8x32xf32, #tpu.memory_space<vmem>>, %arg3: memref<2x8x1xf32, #tpu.memory_space<vmem>>, %arg4: memref<2x1xf32, #tpu.memory_space<vmem>>, %arg5: memref<32x16xf32, #tpu.memory_space<vmem>>, %arg6: memref<1x16xf32, #tpu.memory_space<vmem>>, %arg7: memref<16x128xf32, #tpu.memory_space<vmem>>, %arg8: memref<2x128xf32, #tpu.memory_space<vmem>>, %arg9: memref<2x32xf32, #tpu.memory_space<vmem>>) attributes {dimension_semantics = [#tpu.dimension_semantics<parallel>, #tpu.dimension_semantics<arbitrary>], iteration_bounds = array<i64: 1, 1>, scalar_prefetch = 0 : i64, scratch_operands = 1 : i64, tpu.core_type = #tpu.core_type<tc>, window_params = [{transform_indices = @transform_0, window_bounds = array<i64: 2, 8, 32>}, {transform_indices = @transform_1, window_bounds = array<i64: 2, 8, 1>}, {transform_indices = @transform_2, window_bounds = array<i64: 2, 1>}, {pipeline_mode = #tpu.pipeline_mode<synchronous>, transform_indices = @transform_3, window_bounds = array<i64: 32, 16>}, {pipeline_mode = #tpu.pipeline_mode<synchronous>, transform_indices = @transform_4, window_bounds = array<i64: 1, 16>}, {pipeline_mode = #tpu.pipeline_mode<synchronous>, transform_indices = @transform_5, window_bounds = array<i64: 16, 128>}, {transform_indices = @transform_6, window_bounds = array<i64: 2, 128>}]} {
    %c0_i32 = arith.constant 0 : i32
    %0 = arith.cmpi eq, %arg1, %c0_i32 : i32
    %1 = arith.extui %0 : i1 to i32
    %c0_i32_0 = arith.constant 0 : i32
    %2 = arith.cmpi ne, %1, %c0_i32_0 : i32
    scf.if %2 {
      %cst_12 = arith.constant 0.000000e+00 : f32
      %14 = vector.broadcast %cst_12 : f32 to vector<2x32xf32>
      %c0_13 = arith.constant 0 : index
      %c0_14 = arith.constant 0 : index
      %15 = vector.load %arg9[%c0_13, %c0_14] : memref<2x32xf32, #tpu.memory_space<vmem>>, vector<2x32xf32>
      tpu.vector_store %arg9[%c0_13, %c0_14], %14 {strides = array<i32>} : memref<2x32xf32, #tpu.memory_space<vmem>>, vector<2x32xf32>,
    } else {
    }
    %c0 = arith.constant 0 : index
    %c0_1 = arith.constant 0 : index
    %c0_2 = arith.constant 0 : index
    %3 = vector.load %arg2[%c0, %c0_1, %c0_2] : memref<2x8x32xf32, #tpu.memory_space<vmem>>, vector<2x8x32xf32>
    %c0_3 = arith.constant 0 : index
    %c0_4 = arith.constant 0 : index
    %c0_5 = arith.constant 0 : index
    %4 = vector.load %arg3[%c0_3, %c0_4, %c0_5] : memref<2x8x1xf32, #tpu.memory_space<vmem>>, vector<2x8x1xf32>
    %5 = vector.broadcast %4 : vector<2x8x1xf32> to vector<2x8x32xf32>
    %6 = arith.mulf %3, %5 : vector<2x8x32xf32>
    %c0_6 = arith.constant 0 : index
    %c0_7 = arith.constant 0 : index
    %7 = vector.load %arg9[%c0_6, %c0_7] : memref<2x32xf32, #tpu.memory_space<vmem>>, vector<2x32xf32>
    %cst = arith.constant dense<0.000000e+00> : vector<2x32xf32>
    %8 = vector.multi_reduction <add>, %6, %cst [1] : vector<2x8x32xf32> to vector<2x32xf32>
    %9 = arith.addf %7, %8 : vector<2x32xf32>
    %c0_8 = arith.constant 0 : index
    %c0_9 = arith.constant 0 : index
    %10 = vector.load %arg9[%c0_8, %c0_9] : memref<2x32xf32, #tpu.memory_space<vmem>>, vector<2x32xf32>
    tpu.vector_store %arg9[%c0_8, %c0_9], %9 {strides = array<i32>} : memref<2x32xf32, #tpu.memory_space<vmem>>, vector<2x32xf32>,
    %c0_i32_10 = arith.constant 0 : i32
    %11 = arith.cmpi eq, %arg1, %c0_i32_10 : i32
    %12 = arith.extui %11 : i1 to i32
    %c0_i32_11 = arith.constant 0 : i32
    %13 = arith.cmpi ne, %12, %c0_i32_11 : i32
    scf.if %13 {
      %c0_12 = arith.constant 0 : index
      %c0_13 = arith.constant 0 : index
      %14 = vector.load %arg9[%c0_12, %c0_13] : memref<2x32xf32, #tpu.memory_space<vmem>>, vector<2x32xf32>
      %c0_14 = arith.constant 0 : index
      %c0_15 = arith.constant 0 : index
      %15 = vector.load %arg4[%c0_14, %c0_15] : memref<2x1xf32, #tpu.memory_space<vmem>>, vector<2x1xf32>
      %16 = vector.broadcast %15 : vector<2x1xf32> to vector<2x32xf32>
      %17 = arith.mulf %14, %16 : vector<2x32xf32>
      %c0_16 = arith.constant 0 : index
      %c0_17 = arith.constant 0 : index
      %18 = vector.load %arg5[%c0_16, %c0_17] : memref<32x16xf32, #tpu.memory_space<vmem>>, vector<32x16xf32>
      %cst_18 = arith.constant dense<0.000000e+00> : vector<2x16xf32>
      %19 = tpu.matmul %17, %18, %cst_18 {dimension_numbers = #tpu.dot_dimension_numbers<[1], [0], [0], [1], [0, 0, 1, 1], [], []>} : vector<2x32xf32>, vector<32x16xf32>, vector<2x16xf32> -> vector<2x16xf32>
      %c0_19 = arith.constant 0 : index
      %c0_20 = arith.constant 0 : index
      %20 = vector.load %arg6[%c0_19, %c0_20] : memref<1x16xf32, #tpu.memory_space<vmem>>, vector<1x16xf32>
      %21 = vector.broadcast %20 : vector<1x16xf32> to vector<2x16xf32>
      %22 = arith.addf %19, %21 : vector<2x16xf32>
      %c0_21 = arith.constant 0 : index
      %c0_22 = arith.constant 0 : index
      %23 = vector.load %arg7[%c0_21, %c0_22] : memref<16x128xf32, #tpu.memory_space<vmem>>, vector<16x128xf32>
      %cst_23 = arith.constant dense<0.000000e+00> : vector<2x128xf32>
      %24 = tpu.matmul %22, %23, %cst_23 {dimension_numbers = #tpu.dot_dimension_numbers<[1], [0], [0], [1], [0, 0, 1, 1], [], []>} : vector<2x16xf32>, vector<16x128xf32>, vector<2x128xf32> -> vector<2x128xf32>
      %c0_24 = arith.constant 0 : index
      %c0_25 = arith.constant 0 : index
      %25 = vector.load %arg8[%c0_24, %c0_25] : memref<2x128xf32, #tpu.memory_space<vmem>>, vector<2x128xf32>
      tpu.vector_store %arg8[%c0_24, %c0_25], %24 {strides = array<i32>} : memref<2x128xf32, #tpu.memory_space<vmem>>, vector<2x128xf32>,
    } else {
    }
    return
  }
  func.func @transform_0(%arg0: i32, %arg1: i32) -> (i32, i32, i32) {
    %c0_i32 = arith.constant 0 : i32
    %c0_i32_0 = arith.constant 0 : i32
    return %arg0, %arg1, %c0_i32 : i32, i32, i32
  }
  func.func @transform_1(%arg0: i32, %arg1: i32) -> (i32, i32, i32) {
    %c0_i32 = arith.constant 0 : i32
    %c0_i32_0 = arith.constant 0 : i32
    return %arg0, %arg1, %c0_i32 : i32, i32, i32
  }
  func.func @transform_2(%arg0: i32, %arg1: i32) -> (i32, i32) {
    %c0_i32 = arith.constant 0 : i32
    %c0_i32_0 = arith.constant 0 : i32
    return %arg0, %c0_i32 : i32, i32
  }
  func.func @transform_3(%arg0: i32, %arg1: i32) -> (i32, i32) {
    %c0_i32 = arith.constant 0 : i32
    %c0_i32_0 = arith.constant 0 : i32
    %c0_i32_1 = arith.constant 0 : i32
    return %c0_i32, %c0_i32_0 : i32, i32
  }
  func.func @transform_4(%arg0: i32, %arg1: i32) -> (i32, i32) {
    %c0_i32 = arith.constant 0 : i32
    %c0_i32_0 = arith.constant 0 : i32
    %c0_i32_1 = arith.constant 0 : i32
    return %c0_i32, %c0_i32_0 : i32, i32
  }
  func.func @transform_5(%arg0: i32, %arg1: i32) -> (i32, i32) {
    %c0_i32 = arith.constant 0 : i32
    %c0_i32_0 = arith.constant 0 : i32
    %c0_i32_1 = arith.constant 0 : i32
    return %c0_i32, %c0_i32_0 : i32, i32
  }
  func.func @transform_6(%arg0: i32, %arg1: i32) -> (i32, i32) {
    %c0_i32 = arith.constant 0 : i32
    %c0_i32_0 = arith.constant 0 : i32
    return %arg0, %c0_i32 : i32, i32
  }
}

</mosaic_0001>

<bundles_post_ra>
// kernel: tpu_custom_call.1
= control target key start
LH: loop header
LB: loop body
LE: loop exit
PB: predicated region body
PF: predicated region fallthrough
CT: control target
= control target key end

     0   :  { %v325_v2 = vmov 0   ;;  %s418_s0 = inlined_call_operand.vmem [shape: f32[2,8,32], index: 0, kind: input, shape index: {}]   ;;  %s419_s1 = inlined_call_operand.vmem [shape: f32[2,8,1], index: 1, kind: input, shape index: {}]   ;;  %s420_s2 = inlined_call_operand.vmem [shape: f32[2,1], index: 2, kind: input, shape index: {}]   ;;  %s421_s3 = inlined_call_operand.vmem [shape: f32[32,16], index: 3, kind: input, shape index: {}]   ;;  %s422_s4 = inlined_call_operand.vmem [shape: f32[1,16], index: 4, kind: input, shape index: {}]   ;;  %s423_s5 = inlined_call_operand.vmem [shape: f32[16,128], index: 5, kind: input, shape index: {}]   ;;  %s424_s6 = inlined_call_operand.hbm [shape: f32[2,128], index: 6, kind: output, shape index: {}]  }
   0x1   :  { %v32_v0 = vld [vmem:[%s419_s1] sm:$0xff]  ;;  %299 = vset.pattern.permute.xlu0 %v325_v2  ;;  %300 = vset.pattern.permute.xlu1 %v325_v2 }
   0x2   :  { %v74_v1 = vld [vmem:[%s420_s2] sm:$0x3] }
   0x3   :  { %11 = vsyncpa [#allocation4], 0  ;;  %36 = vperm.xlu0 %299, %v32_v0   ;;  %77 = vperm.xlu1 %300, %v74_v1   ;;  %v33_v3 = vld [vmem:[%s419_s1 + $0x8] sm:$0xff]  ;;  %vm28_vm0 = vcmask 254976   ;;  %v326_v4 = vmov 0.0   ;;  %v81_v5 = vld [vmem:[%s421_s3] sm:$0xff] }
   0x4   :  { %29 = vst.msk [vmem:[#allocation2] sm:$0x3] %vm28_vm0, %v326_v4  ;;  %v82_v6 = vld [vmem:[%s421_s3 + $0x8] sm:$0xff]  ;;  %v83_v7 = vld [vmem:[%s421_s3 + $0x10] sm:$0xff]  ;;  %v327_v8 = vmov 0.0|0.0   ;;  %v84_v10 = vld [vmem:[%s421_s3 + $0x18] sm:$0xff] }
   0x5   :  { %285 = vmatprep.subr.bf16.mxu0 %v327_v8  ;;  %v286_v9 = vpack.c.bf16 %v82_v6, %v81_v5  ;;  %291 = vmatprep.subr.bf16.mxu1 %v327_v8  ;;  %v289_v11 = vpack.c.bf16 %v84_v10, %v83_v7  ;;  %vm328_vm1 = vmmov 0   ;;  %v30_v12 = vld [vmem:[%s418_s0] sm:$0xff]  ;;  %vm47_vm2 = vcmask 261120   ;;  %v31_v15 = vld [vmem:[%s418_s0 + $0x8] sm:$0xff]  ;;  %s329_s17 = smov [#allocation3]  }
   0x6   :  { %275 = vmatprep.mubr.msk.f32.mxu0 %vm328_vm1, %v326_v4  ;;  %282 = vmatprep.mubr.msk.f32.mxu1 %vm328_vm1, %v326_v4  ;;  %vm64_vm3 = vcmask 1041409   ;;  %v165_v38 = vld [vmem:[%s423_s5] sm:$0xff]  ;;  %v166_v39 = vld [vmem:[%s423_s5 + $0x8] sm:$0xff]  ;;  %vm167_vm4 = vcmask 130048   ;;  %s248_s18 = sshll.u32 %s329_s17, 4  ;;  %s249_s18 = int_to_ptr.vmem [resolvable:$true] %s248_s18 }
   0x7   :  { %41 = vperm.xlu0 %299, %v33_v3   ;;  %287 = vmatpush3.bf16.msra.mxu0 %v286_v9  ;;  %v292_v40 = vpack.c.bf16 %v166_v39, %v165_v38  ;;  %v256_v41 = vld [vmem:[%s422_s4] ss:$0 sm:$0xff]  ;;  %s301_s19 = scalar_lea.vmem %s249_s18, 32  ;;  %p306_p1 = scmp.lt.s32.totalorder %s249_s18, %s249_s18 }
   0x8   :  { %288 = vmatprep.subr.bf16.mxu0 %v327_v8  ;;  %p302_p0 = scmp.ne.s32.totalorder %s249_s18, %s301_s19  ;;  %p307_p2 = scmp.lt.s32.totalorder %s301_s19, %s301_s19 }
   0x9   :  { %293 = vmatpush3.bf16.msra.mxu1 %v292_v40 }
   0xa   :  { %p308_p3 = por %p307_p2, %p306_p1 }
   0xb   :  { %290 = vmatpush3.bf16.msra.mxu0 %v289_v11  ;;  %v46_v32 = vld [vmem:[#allocation2] sm:$0x3] }
   0xc   :  { %p309_p4 = pnand %p308_p3, %p302_p0 }
  0x82   :  { %v37_v13 = vpop.permute.xlu0 %36  ;;  %v78_v35 = vpop.permute.xlu1 %77 }
  0x83   :  { %v44_v14 = vmul.f32 %v37_v13, %v30_v12 }
  0x85   :  { %v48_v16 = vsel %vm47_vm2, %v44_v14, 0.0 }
  0x86   :  { %v49_v17 = vrot.slane %v48_v16, 4  ;;  %v42_v18 = vpop.permute.xlu0 %41 }
  0x87   :  { %v45_v19 = vmul.f32 %v42_v18, %v31_v15 }
  0x88   :  { %v50_v20 = vadd.f32 %v49_v17, %v48_v16 }
  0x89   :  { %v55_v21 = vsel %vm47_vm2, %v45_v19, 0.0 }
  0x8a   :  { %v51_v22 = vrot.slane %v50_v20, 2  ;;  %v56_v23 = vrot.slane %v55_v21, 4 }
  0x8c   :  { %v52_v24 = vadd.f32 %v51_v22, %v50_v20  ;;  %v57_v25 = vadd.f32 %v56_v23, %v55_v21 }
  0x8e   :  { %v58_v26 = vrot.slane %v57_v25, 2  ;;  %v53_v27 = vrot.slane %v52_v24, 1 }
  0x90   :  { %v59_v28 = vadd.f32 %v58_v26, %v57_v25  ;;  %v54_v30 = vadd.f32 %v53_v27, %v52_v24 }
  0x92   :  { %v60_v29 = vrot.slane %v59_v28, 1 }
  0x94   :  { %v61_v31 = vadd.f32 %v60_v29, %v59_v28 }
  0x96   :  { %v65_v33 = vsel %vm64_vm3, %v61_v31, %v54_v30 }
  0x97   :  { %v67_v34 = vadd.f32 %v65_v33, %v46_v32 }
  0x99   :  { %69 = vst.msk [vmem:[#allocation2] sm:$0x3] %vm28_vm0, %v67_v34 }
  0xa0   :  { %v73_v36 = vld [vmem:[#allocation2] sm:$0x3] }
  0xa1   :  { %v80_v37 = vmul.f32 %v78_v35, %v73_v36 }
  0xa3   :  { %276 = vmatmul.mubr.msk.f32.vlgmr.msra.gmra.mrb[0].mxu0 %vm47_vm2, %v80_v37 }
 0x176   :  { %v161_v42 = vpop.f32.mrb[0].mxu0 }
 0x177   :  { %v162_v43 = vadd.f32 %v256_v41, %v161_v42  ;;  %v277_v44 = vpop.f32.mrb[1].mxu0 }
 0x179   :  { %283 = vmatmul.mubr.msk.f32.vlgmr.msra.gmra.mrb[0].mxu1 %vm167_vm4, %v162_v43 }
 0x24c   :  { %v237_v45 = vpop.f32.mrb[0].mxu1 }
 0x24d   :  { %241 = vst [vmem:[#allocation3] sm:$0x3] %v237_v45  ;;  %v284_v46 = vpop.f32.mrb[1].mxu1 }
 0x24e   :  { %312 = shalt.err (!%p309_p4)
}
 0x24f   :  { %s313_s20 = scalar_lea.hbm %s424_s6, 32 }
 0x250   :  { %p314_p5 = scmp.ne.s32.totalorder %s424_s6, %s313_s20  ;;  %p317_p6 = scmp.lt.u32.totalorder %s313_s20, %s424_s6 }
 0x252   :  { %p319_p7 = pnand %p317_p6, %p314_p5 }
 0x254   :  { %322 = shalt.err (!%p319_p7)
}
 0x255   :  { %251 = dma.vmem_to_hbm [thread:$0]  %s249_s18, 32, %s424_s6, [#allocation4]  }
 0x256   :  { %323 = dma.done.wait [#allocation4], 32  }
 0x257   :  { %324 = vsyncadd [#allocation4], 4294967264 }
 0x258   :  { %255 = vsyncpa [#allocation4], 1 }

</bundles_post_ra>
